<compile_context>
chip_gen: v7x
topology: tpu7x:2x2x1
jax: 0.10.0
libtpu: 0.0.40
codegen_flags: <defaults>
</compile_context>

<pallas_src>
import jax
import jax.numpy as jnp
from jax.experimental import pallas as pl
from jax.experimental.pallas import tpu as pltpu

# ----------------------------- configuration --------------------------------
N_NUMERIC = 4                      # in_features (before +1 for time)
NUM_EMBEDDINGS = (5, 7)            # vocab sizes of the 2 categorical columns
EMBEDDING_DIMS = (3, 2)
NUM_NODES = (32, 32)               # hidden layer widths
BATCH = 16
BN_EPS = 1e-5
LANE = 128                         # TPU lane width; all feature dims padded to this


# ------------------------------ Pallas kernel --------------------------------
def mixed_mlp_kernel(feat_ref, w0_ref, w1_ref, w2_ref, small_ref, o_ref):
    # feat_ref : [TB, 128]  f32   = [numeric+time | one_hot(cat0) | one_hot(cat1) | 0-pad]
    # w0_ref   : [128, 128] f32   = [W0_num ; emb0@W0_e0 ; emb1@W0_e1 ; 0-pad]  (gather fold)
    # w1_ref   : [128, 128] f32   = s0-scaled W1, zero padded
    # w2_ref   : [128, 128] f32   = s1-scaled W2 in column 0, zero padded
    # small_ref: [8, 128]   f32   = row0: b0, row1: b1 + t0@W1, row2: t1@W2 offset
    feat = feat_ref[...]
    b0 = small_ref[0:1, :]
    b1 = small_ref[1:2, :]
    off = small_ref[2:3, :]

    # Hidden block 0: Linear (+ embedding gather via folded one-hot matmul) -> ReLU.
    a0 = jnp.maximum(
        jnp.dot(feat, w0_ref[...], preferred_element_type=jnp.float32) + b0, 0.0)
    # Hidden block 1: Linear (BN0 folded into W1/b1) -> ReLU.
    a1 = jnp.maximum(
        jnp.dot(a0, w1_ref[...], preferred_element_type=jnp.float32) + b1, 0.0)
    # Output Linear (BN1 folded into W2, no bias); lane-dense 128-wide store.
    o_ref[...] = jnp.dot(a1, w2_ref[...], preferred_element_type=jnp.float32) + off


# --------------------------- offline parameter fold ---------------------------
def _pad2(a, rows, cols):
    return jnp.pad(a, ((0, rows - a.shape[0]), (0, cols - a.shape[1])))


def fold_params(p):
    """Exact eval-mode fold of embeddings + BatchNorm into three padded weights."""
    n_in = N_NUMERIC + 1
    h0, h1 = NUM_NODES
    v0, v1 = NUM_EMBEDDINGS
    d_feat = n_in + v0 + v1
    assert d_feat <= LANE and h0 <= LANE and h1 <= LANE

    s0 = p["bn0_gamma"] / jnp.sqrt(p["bn0_var"] + BN_EPS)
    t0 = p["bn0_beta"] - p["bn0_mean"] * s0
    s1 = p["bn1_gamma"] / jnp.sqrt(p["bn1_var"] + BN_EPS)
    t1 = p["bn1_beta"] - p["bn1_mean"] * s1

    # Layer 0: stack [numeric-block ; emb0@W0e0 ; emb1@W0e1] so one matmul performs
    # both the first Linear and the embedding gather (one_hot @ table).
    w0f = jnp.concatenate(
        [p["w0n"], p["emb0"] @ p["w0e0"], p["emb1"] @ p["w0e1"]], axis=0)   # [d_feat, h0]
    b0f = p["b0"].reshape(1, h0)

    # Layer 1: BN0 folded through W1.
    w1f = s0[:, None] * p["w1"]                                              # [h0, h1]
    b1f = p["b1"].reshape(1, h1) + t0.reshape(1, h0) @ p["w1"]

    # Output layer: BN1 folded through W2 (module has no output bias).
    w2f = s1[:, None] * p["w2"]                                              # [h1, 1]
    off = t1.reshape(1, h1) @ p["w2"]                                        # [1, 1]

    # Zero-pad all lane/sublane dims to 128 (exact: padded weights/biases are 0).
    small = jnp.concatenate(
        [_pad2(b0f, 1, LANE), _pad2(b1f, 1, LANE), _pad2(off, 1, LANE),
         jnp.zeros((5, LANE), jnp.float32)], axis=0)                         # [8, 128]
    return {
        "w0": _pad2(w0f, LANE, LANE).astype(jnp.float32),
        "w1": _pad2(w1f, LANE, LANE).astype(jnp.float32),
        "w2": _pad2(w2f, LANE, LANE).astype(jnp.float32),
        "small": small.astype(jnp.float32),
    }


# ------------------------------ wrapper ---------------------------------------
def _round_up(a, m):
    return ((a + m - 1) // m) * m


def mixed_input_mlp_coxtime(input_numeric, input_categoric, time, folded, *, tb=None):
    n_in = N_NUMERIC + 1
    v0, v1 = NUM_EMBEDDINGS

    # torch.cat([input_numeric, time], dim=1) + one-hot indicator layout (the gather
    # itself happens in-kernel as one_hot @ folded-embedding block of W0).
    x = jnp.concatenate([input_numeric, time], axis=1).astype(jnp.float32)   # [B, n_in]
    cat = input_categoric.astype(jnp.int32)
    oh0 = jax.nn.one_hot(cat[:, 0], v0, dtype=jnp.float32)
    oh1 = jax.nn.one_hot(cat[:, 1], v1, dtype=jnp.float32)
    feat = jnp.concatenate([x, oh0, oh1], axis=1)                            # [B, d_feat]

    b = feat.shape[0]
    bp = _round_up(b, 8)
    if tb is None:
        tb = bp if bp <= 512 else 256          # whole batch in one tile when small
    bp = _round_up(bp, tb)
    feat = jnp.pad(feat, ((0, bp - b), (0, LANE - feat.shape[1])))           # [bp, 128]

    grid = (bp // tb,)
    out = pl.pallas_call(
        mixed_mlp_kernel,
        out_shape=jax.ShapeDtypeStruct((bp, LANE), jnp.float32),
        grid=grid,
        in_specs=[
            pl.BlockSpec((tb, LANE), lambda i: (i, 0)),        # features (lane-dense)
            pl.BlockSpec((LANE, LANE), lambda i: (0, 0)),      # folded W0 (+ emb tables)
            pl.BlockSpec((LANE, LANE), lambda i: (0, 0)),      # folded W1
            pl.BlockSpec((LANE, LANE), lambda i: (0, 0)),      # folded W2
            pl.BlockSpec((8, LANE), lambda i: (0, 0)),         # packed b0 / b1 / offset
        ],
        out_specs=pl.BlockSpec((tb, LANE), lambda i: (i, 0)),  # lane-dense output slab
        compiler_params=pltpu.CompilerParams(
            dimension_semantics=("parallel",)),
    )(feat, folded["w0"], folded["w1"], folded["w2"], folded["small"])

    return out[:b, :1]                                          # [B, 1]


# --------------------------- deterministic init -------------------------------
def init_params(key):
    ks = jax.random.split(key, 16)
    n_in = N_NUMERIC + 1
    h0, h1 = NUM_NODES
    v0, v1 = NUM_EMBEDDINGS
    e0d, e1d = EMBEDDING_DIMS
    d_in_total = n_in + e0d + e1d

    def kaiming(k, fan_in, shape):
        # kaiming_normal_(nonlinearity='relu') -> std = sqrt(2 / fan_in)
        return jax.random.normal(k, shape, jnp.float32) * jnp.sqrt(2.0 / fan_in)

    p = {}
    # nn.Embedding default init: N(0, 1)
    p["emb0"] = jax.random.normal(ks[0], (v0, e0d), jnp.float32)
    p["emb1"] = jax.random.normal(ks[1], (v1, e1d), jnp.float32)
    # First Linear takes [numeric+time | emb0 | emb1]; stored split by block.
    w0 = kaiming(ks[2], d_in_total, (d_in_total, h0))
    p["w0n"] = w0[:n_in]
    p["w0e0"] = w0[n_in:n_in + e0d]
    p["w0e1"] = w0[n_in + e0d:]
    p["b0"] = (jax.random.uniform(ks[3], (1, h0), jnp.float32) - 0.5) * 0.2
    p["w1"] = kaiming(ks[4], h0, (h0, h1))
    p["b1"] = (jax.random.uniform(ks[5], (1, h1), jnp.float32) - 0.5) * 0.2
    p["w2"] = kaiming(ks[6], h1, (h1, 1))
    # BatchNorm params (synthetic deterministic running stats, eval mode).
    p["bn0_gamma"] = 1.0 + 0.1 * jax.random.normal(ks[7], (h0,), jnp.float32)
    p["bn0_beta"] = 0.1 * jax.random.normal(ks[8], (h0,), jnp.float32)
    p["bn0_mean"] = 0.1 * jax.random.normal(ks[9], (h0,), jnp.float32)
    p["bn0_var"] = 0.5 + jax.random.uniform(ks[10], (h0,), jnp.float32)
    p["bn1_gamma"] = 1.0 + 0.1 * jax.random.normal(ks[11], (h1,), jnp.float32)
    p["bn1_beta"] = 0.1 * jax.random.normal(ks[12], (h1,), jnp.float32)
    p["bn1_mean"] = 0.1 * jax.random.normal(ks[13], (h1,), jnp.float32)
    p["bn1_var"] = 0.5 + jax.random.uniform(ks[14], (h1,), jnp.float32)
    return p


# ------------------------------ pure-JAX reference ----------------------------
def reference(input_numeric, input_categoric, time, p):
    x = jnp.concatenate([input_numeric, time], axis=1)
    e0 = p["emb0"][input_categoric[:, 0]]
    e1 = p["emb1"][input_categoric[:, 1]]
    feat = jnp.concatenate([x, e0, e1], axis=1)
    w0 = jnp.concatenate([p["w0n"], p["w0e0"], p["w0e1"]], axis=0)

    def block(h, w, b, g, be, m, v):
        h = jnp.maximum(h @ w + b, 0.0)
        return (h - m) / jnp.sqrt(v + BN_EPS) * g + be

    h = block(feat, w0, p["b0"], p["bn0_gamma"], p["bn0_beta"], p["bn0_mean"], p["bn0_var"])
    h = block(h, p["w1"], p["b1"], p["bn1_gamma"], p["bn1_beta"], p["bn1_mean"], p["bn1_var"])
    return h @ p["w2"]


# ------------------------------------ main ------------------------------------
if __name__ == "__main__":
    key = jax.random.PRNGKey(0)
    k_num, k_cat, k_time, k_params = jax.random.split(key, 4)

    input_numeric = jax.random.normal(k_num, (BATCH, N_NUMERIC), jnp.float32)
    input_categoric = jnp.stack(
        [jax.random.randint(k_cat, (BATCH,), 0, NUM_EMBEDDINGS[0]),
         jax.random.randint(jax.random.fold_in(k_cat, 1), (BATCH,), 0, NUM_EMBEDDINGS[1])],
        axis=1).astype(jnp.int32)
    time = jax.random.uniform(k_time, (BATCH, 1), jnp.float32)

    params = init_params(k_params)
    folded = jax.tree.map(jax.block_until_ready, fold_params(params))  # one-time fold

    out = mixed_input_mlp_coxtime(input_numeric, input_categoric, time, folded)
    out = jax.block_until_ready(out)

    ref = reference(input_numeric, input_categoric, time, params)
    assert out.shape == (BATCH, 1)
    assert jnp.allclose(out, ref, atol=1e-4, rtol=1e-4), (out, ref)
    print("KERNEL_OK")
</pallas_src>

<mosaic_0001>
module attributes {stable_mosaic.version = 11 : i64} {
  func.func @mixed_mlp_kernel(%arg0: i32, %arg1: memref<16x128xf32, #tpu.memory_space<vmem>>, %arg2: memref<128x128xf32, #tpu.memory_space<vmem>>, %arg3: memref<128x128xf32, #tpu.memory_space<vmem>>, %arg4: memref<128x128xf32, #tpu.memory_space<vmem>>, %arg5: memref<8x128xf32, #tpu.memory_space<vmem>>, %arg6: memref<16x128xf32, #tpu.memory_space<vmem>>) attributes {dimension_semantics = [#tpu.dimension_semantics<parallel>], iteration_bounds = array<i64: 1>, scalar_prefetch = 0 : i64, scratch_operands = 0 : i64, tpu.core_type = #tpu.core_type<tc>, window_params = [{transform_indices = @transform_0, window_bounds = array<i64: 16, 128>}, {pipeline_mode = #tpu.pipeline_mode<synchronous>, transform_indices = @transform_1, window_bounds = array<i64: 128, 128>}, {pipeline_mode = #tpu.pipeline_mode<synchronous>, transform_indices = @transform_2, window_bounds = array<i64: 128, 128>}, {pipeline_mode = #tpu.pipeline_mode<synchronous>, transform_indices = @transform_3, window_bounds = array<i64: 128, 128>}, {pipeline_mode = #tpu.pipeline_mode<synchronous>, transform_indices = @transform_4, window_bounds = array<i64: 8, 128>}, {transform_indices = @transform_5, window_bounds = array<i64: 16, 128>}]} {
    %c0 = arith.constant 0 : index
    %c0_0 = arith.constant 0 : index
    %0 = vector.load %arg1[%c0, %c0_0] : memref<16x128xf32, #tpu.memory_space<vmem>>, vector<16x128xf32>
    %c0_1 = arith.constant 0 : index
    %c0_2 = arith.constant 0 : index
    %1 = vector.load %arg5[%c0_1, %c0_2] : memref<8x128xf32, #tpu.memory_space<vmem>>, vector<1x128xf32>
    %c1 = arith.constant 1 : index
    %c0_3 = arith.constant 0 : index
    %2 = vector.load %arg5[%c1, %c0_3] : memref<8x128xf32, #tpu.memory_space<vmem>>, vector<1x128xf32>
    %c2 = arith.constant 2 : index
    %c0_4 = arith.constant 0 : index
    %3 = vector.load %arg5[%c2, %c0_4] : memref<8x128xf32, #tpu.memory_space<vmem>>, vector<1x128xf32>
    %c0_5 = arith.constant 0 : index
    %c0_6 = arith.constant 0 : index
    %4 = vector.load %arg2[%c0_5, %c0_6] : memref<128x128xf32, #tpu.memory_space<vmem>>, vector<128x128xf32>
    %cst = arith.constant dense<0.000000e+00> : vector<16x128xf32>
    %5 = tpu.matmul %0, %4, %cst {dimension_numbers = #tpu.dot_dimension_numbers<[1], [0], [0], [1], [0, 0, 1, 1], [], []>} : vector<16x128xf32>, vector<128x128xf32>, vector<16x128xf32> -> vector<16x128xf32>
    %6 = vector.broadcast %1 : vector<1x128xf32> to vector<16x128xf32>
    %7 = arith.addf %5, %6 : vector<16x128xf32>
    %cst_7 = arith.constant 0.000000e+00 : f32
    %8 = vector.broadcast %cst_7 : f32 to vector<16x128xf32>
    %9 = arith.maximumf %7, %8 : vector<16x128xf32>
    %c0_8 = arith.constant 0 : index
    %c0_9 = arith.constant 0 : index
    %10 = vector.load %arg3[%c0_8, %c0_9] : memref<128x128xf32, #tpu.memory_space<vmem>>, vector<128x128xf32>
    %cst_10 = arith.constant dense<0.000000e+00> : vector<16x128xf32>
    %11 = tpu.matmul %9, %10, %cst_10 {dimension_numbers = #tpu.dot_dimension_numbers<[1], [0], [0], [1], [0, 0, 1, 1], [], []>} : vector<16x128xf32>, vector<128x128xf32>, vector<16x128xf32> -> vector<16x128xf32>
    %12 = vector.broadcast %2 : vector<1x128xf32> to vector<16x128xf32>
    %13 = arith.addf %11, %12 : vector<16x128xf32>
    %cst_11 = arith.constant 0.000000e+00 : f32
    %14 = vector.broadcast %cst_11 : f32 to vector<16x128xf32>
    %15 = arith.maximumf %13, %14 : vector<16x128xf32>
    %c0_12 = arith.constant 0 : index
    %c0_13 = arith.constant 0 : index
    %16 = vector.load %arg4[%c0_12, %c0_13] : memref<128x128xf32, #tpu.memory_space<vmem>>, vector<128x128xf32>
    %cst_14 = arith.constant dense<0.000000e+00> : vector<16x128xf32>
    %17 = tpu.matmul %15, %16, %cst_14 {dimension_numbers = #tpu.dot_dimension_numbers<[1], [0], [0], [1], [0, 0, 1, 1], [], []>} : vector<16x128xf32>, vector<128x128xf32>, vector<16x128xf32> -> vector<16x128xf32>
    %18 = vector.broadcast %3 : vector<1x128xf32> to vector<16x128xf32>
    %19 = arith.addf %17, %18 : vector<16x128xf32>
    %c0_15 = arith.constant 0 : index
    %c0_16 = arith.constant 0 : index
    %20 = vector.load %arg6[%c0_15, %c0_16] : memref<16x128xf32, #tpu.memory_space<vmem>>, vector<16x128xf32>
    tpu.vector_store %arg6[%c0_15, %c0_16], %19 {strides = array<i32>} : memref<16x128xf32, #tpu.memory_space<vmem>>, vector<16x128xf32>,
    return
  }
  func.func @transform_0(%arg0: i32) -> (i32, i32) {
    %c0_i32 = arith.constant 0 : i32
    %c0_i32_0 = arith.constant 0 : i32
    return %arg0, %c0_i32 : i32, i32
  }
  func.func @transform_1(%arg0: i32) -> (i32, i32) {
    %c0_i32 = arith.constant 0 : i32
    %c0_i32_0 = arith.constant 0 : i32
    %c0_i32_1 = arith.constant 0 : i32
    return %c0_i32, %c0_i32_0 : i32, i32
  }
  func.func @transform_2(%arg0: i32) -> (i32, i32) {
    %c0_i32 = arith.constant 0 : i32
    %c0_i32_0 = arith.constant 0 : i32
    %c0_i32_1 = arith.constant 0 : i32
    return %c0_i32, %c0_i32_0 : i32, i32
  }
  func.func @transform_3(%arg0: i32) -> (i32, i32) {
    %c0_i32 = arith.constant 0 : i32
    %c0_i32_0 = arith.constant 0 : i32
    %c0_i32_1 = arith.constant 0 : i32
    return %c0_i32, %c0_i32_0 : i32, i32
  }
  func.func @transform_4(%arg0: i32) -> (i32, i32) {
    %c0_i32 = arith.constant 0 : i32
    %c0_i32_0 = arith.constant 0 : i32
    %c0_i32_1 = arith.constant 0 : i32
    return %c0_i32, %c0_i32_0 : i32, i32
  }
  func.func @transform_5(%arg0: i32) -> (i32, i32) {
    %c0_i32 = arith.constant 0 : i32
    %c0_i32_0 = arith.constant 0 : i32
    return %arg0, %c0_i32 : i32, i32
  }
}

</mosaic_0001>

<bundles_post_ra>
// kernel: tpu_custom_call.1
= control target key start
LH: loop header
LB: loop body
LE: loop exit
PB: predicated region body
PF: predicated region fallthrough
CT: control target
= control target key end

     0   :  { %10 = vsyncpa [#allocation3], 0  ;;  %s909_s0 = inlined_call_operand.hbm [shape: f32[16,128], index: 0, kind: input, shape index: {}]   ;;  %s910_s1 = inlined_call_operand.hbm [shape: f32[128,128], index: 1, kind: input, shape index: {}]   ;;  %s911_s2 = inlined_call_operand.hbm [shape: f32[128,128], index: 2, kind: input, shape index: {}]   ;;  %s912_s3 = inlined_call_operand.hbm [shape: f32[128,128], index: 3, kind: input, shape index: {}]   ;;  %s913_s4 = inlined_call_operand.vmem [shape: f32[8,128], index: 4, kind: input, shape index: {}]   ;;  %s914_s5 = inlined_call_operand.hbm [shape: f32[16,128], index: 5, kind: output, shape index: {}]  }
   0x1   :  { %11 = vsyncpa [#allocation6], 0 }
   0x2   :  { %12 = vsyncpa [#allocation9], 0 }
   0x3   :  { %13 = vsyncpa [#allocation4], 0  ;;  %s774_s18 = smov [#allocation5]   ;;  %s775_s20 = smov [#allocation2]  }
   0x4   :  { %s31_s19 = sshll.u32 %s774_s18, 4  ;;  %s19_s21 = sshll.u32 %s775_s20, 4  ;;  %s32_s19 = int_to_ptr.vmem [resolvable:$true] %s31_s19  ;;  %s811_s21 = int_to_ptr.vmem [resolvable:$true] %s19_s21 }
   0x5   :  { %s656_s24 = scalar_lea.hbm %s910_s1, 2048 }
   0x6   :  { %p657_p0 = scmp.ne.s32.totalorder %s910_s1, %s656_s24  ;;  %p660_p1 = scmp.lt.u32.totalorder %s656_s24, %s910_s1 }
   0x8   :  { %p662_p2 = pnand %p660_p1, %p657_p0 }
   0xa   :  { %665 = shalt.err (!%p662_p2)
}
   0xb   :  { %s666_s29 = scalar_lea.vmem %s32_s19, 2048  ;;  %p671_p4 = scmp.lt.s32.totalorder %s32_s19, %s32_s19 }
   0xc   :  { %p667_p3 = scmp.ne.s32.totalorder %s32_s19, %s666_s29  ;;  %p672_p5 = scmp.lt.s32.totalorder %s666_s29, %s666_s29 }
   0xe   :  { %p673_p6 = por %p672_p5, %p671_p4 }
  0x10   :  { %p674_p7 = pnand %p673_p6, %p667_p3 }
  0x12   :  { %677 = shalt.err (!%p674_p7)
}
  0x13   :  { %s776_s30 = smov 128   ;;  %s777_s6 = smov 8  }
  0x14   :  { %37 = dma.hbm_to_vmem [thread:$0]  %s910_s1, 2048, %s32_s19, [#allocation6], %s776_s30, %s776_s30, %s777_s6  }
  0x15   :  { %s678_s11 = scalar_lea.hbm %s909_s0, 256 }
  0x16   :  { %p679_p8 = scmp.ne.s32.totalorder %s909_s0, %s678_s11  ;;  %p682_p9 = scmp.lt.u32.totalorder %s678_s11, %s909_s0 }
  0x18   :  { %p684_p10 = pnand %p682_p9, %p679_p8 }
  0x1a   :  { %687 = shalt.err (!%p684_p10)
}
  0x1b   :  { %s688_s16 = scalar_lea.vmem %s811_s21, 256  ;;  %p693_p12 = scmp.lt.s32.totalorder %s811_s21, %s811_s21 }
  0x1c   :  { %p689_p11 = scmp.ne.s32.totalorder %s811_s21, %s688_s16  ;;  %p694_p13 = scmp.lt.s32.totalorder %s688_s16, %s688_s16 }
  0x1e   :  { %p695_p0 = por %p694_p13, %p693_p12 }
  0x20   :  { %p696_p1 = pnand %p695_p0, %p689_p11 }
  0x22   :  { %699 = shalt.err (!%p696_p1)
}
  0x23   :  { %25 = dma.hbm_to_vmem [thread:$0]  %s909_s0, 256, %s811_s21, [#allocation3], %s776_s30, %s776_s30, %s777_s6  }
  0x24   :  { %s778_s18 = smov [#allocation7]   ;;  %s779_s20 = smov [#allocation8]  }
  0x25   :  { %s43_s19 = sshll.u32 %s778_s18, 4  ;;  %s55_s22 = sshll.u32 %s779_s20, 4  ;;  %s44_s19 = int_to_ptr.vmem [resolvable:$true] %s43_s19  ;;  %s848_s22 = int_to_ptr.vmem [resolvable:$true] %s55_s22 }
  0x26   :  { %s700_s25 = scalar_lea.hbm %s911_s2, 2048 }
  0x27   :  { %p701_p2 = scmp.ne.s32.totalorder %s911_s2, %s700_s25  ;;  %p704_p3 = scmp.lt.u32.totalorder %s700_s25, %s911_s2 }
  0x29   :  { %p706_p4 = pnand %p704_p3, %p701_p2 }
  0x2b   :  { %709 = shalt.err (!%p706_p4)
}
  0x2c   :  { %s710_s0 = scalar_lea.vmem %s44_s19, 2048  ;;  %p715_p6 = scmp.lt.s32.totalorder %s44_s19, %s44_s19 }
  0x2d   :  { %p711_p5 = scmp.ne.s32.totalorder %s44_s19, %s710_s0  ;;  %p716_p7 = scmp.lt.s32.totalorder %s710_s0, %s710_s0 }
  0x2f   :  { %p717_p8 = por %p716_p7, %p715_p6 }
  0x31   :  { %p718_p9 = pnand %p717_p8, %p711_p5 }
  0x33   :  { %721 = shalt.err (!%p718_p9)
}
  0x34   :  { %49 = dma.hbm_to_vmem [thread:$0]  %s911_s2, 2048, %s44_s19, [#allocation6], %s776_s30, %s776_s30, %s777_s6  }
  0x35   :  { %s722_s10 = scalar_lea.hbm %s912_s3, 2048 }
  0x36   :  { %p723_p10 = scmp.ne.s32.totalorder %s912_s3, %s722_s10  ;;  %p726_p11 = scmp.lt.u32.totalorder %s722_s10, %s912_s3 }
  0x38   :  { %p728_p12 = pnand %p726_p11, %p723_p10 }
  0x3a   :  { %731 = shalt.err (!%p728_p12)
}
  0x3b   :  { %s732_s15 = scalar_lea.vmem %s848_s22, 2048  ;;  %p737_p0 = scmp.lt.s32.totalorder %s848_s22, %s848_s22 }
  0x3c   :  { %p733_p13 = scmp.ne.s32.totalorder %s848_s22, %s732_s15  ;;  %p738_p1 = scmp.lt.s32.totalorder %s732_s15, %s732_s15 }
  0x3e   :  { %p739_p2 = por %p738_p1, %p737_p0 }
  0x40   :  { %p740_p3 = pnand %p739_p2, %p733_p13 }
  0x42   :  { %743 = shalt.err (!%p740_p3)
}
  0x43   :  { %61 = dma.hbm_to_vmem [thread:$0]  %s912_s3, 2048, %s848_s22, [#allocation9], %s776_s30, %s776_s30, %s777_s6  }
  0x44   :  { %766 = dma.done.wait [#allocation3], 256  }
  0x45   :  { %767 = vsyncadd [#allocation3], 4294967040 }
  0x46   :  { %768 = dma.done.wait [#allocation6], 4096  }
  0x47   :  { %769 = vsyncadd [#allocation6], 4294963200 }
  0x48   :  { %770 = dma.done.wait [#allocation9], 2048  }
  0x49   :  { %771 = vsyncadd [#allocation9], 4294965248  ;;  %v81_v0 = vld [vmem:[#allocation5] sm:$0xff]  ;;  %v82_v1 = vld [vmem:[#allocation5 + $0x8] sm:$0xff]  ;;  %s780_s22 = smov [#allocation10]  }
  0x4a   :  { %v83_v2 = vld [vmem:[#allocation5 + $0x10] sm:$0xff]  ;;  %v553_v3 = vpack.c.bf16 %v82_v1, %v81_v0  ;;  %v84_v4 = vld [vmem:[#allocation5 + $0x18] sm:$0xff]  ;;  %v85_v6 = vld [vmem:[#allocation5 + $0x20] sm:$0xff]  ;;  %s377_s23 = sshll.u32 %s780_s22, 4  ;;  %s378_s23 = int_to_ptr.vmem [resolvable:$true] %s377_s23 }
  0x4b   :  { %v557_v5 = vpack.c.bf16 %v84_v4, %v83_v2  ;;  %v86_v7 = vld [vmem:[#allocation5 + $0x28] sm:$0xff]  ;;  %v87_v9 = vld [vmem:[#allocation5 + $0x30] sm:$0xff]  ;;  %v88_v10 = vld [vmem:[#allocation5 + $0x38] sm:$0xff]  ;;  %s744_s24 = scalar_lea.vmem %s378_s23, 256  ;;  %p749_p5 = scmp.lt.s32.totalorder %s378_s23, %s378_s23 }
  0x4c   :  { %554 = vmatprep.subr.bf16.mxu0 %v553_v3  ;;  %v561_v8 = vpack.c.bf16 %v86_v7, %v85_v6  ;;  %v76_v11 = vld [vmem:[#allocation2] sm:$0xff]  ;;  %v178_v12 = vld [vmem:[#allocation7] sm:$0xff]  ;;  %v179_v13 = vld [vmem:[#allocation7 + $0x8] sm:$0xff]  ;;  %v565_v20 = vpack.c.bf16 %v88_v10, %v87_v9  ;;  %p745_p4 = scmp.ne.s32.totalorder %s378_s23, %s744_s24  ;;  %p750_p6 = scmp.lt.s32.totalorder %s744_s24, %s744_s24 }
  0x4d   :  { %556 = vmatpush3.bf16.msra.mxu0 %v553_v3  ;;  %480 = vmatprep.mubr.f32.mxu0 %v76_v11  ;;  %v180_v14 = vld [vmem:[#allocation7 + $0x10] sm:$0xff]  ;;  %v585_v15 = vpack.c.bf16 %v179_v13, %v178_v12  ;;  %v181_v16 = vld [vmem:[#allocation7 + $0x18] sm:$0xff]  ;;  %v182_v18 = vld [vmem:[#allocation7 + $0x20] sm:$0xff] }
  0x4e   :  { %558 = vmatprep.subr.bf16.mxu0 %v557_v5  ;;  %v589_v17 = vpack.c.bf16 %v181_v16, %v180_v14  ;;  %v183_v19 = vld [vmem:[#allocation7 + $0x28] sm:$0xff]  ;;  %v89_v21 = vld [vmem:[#allocation5 + $0x40] sm:$0xff]  ;;  %v184_v24 = vld [vmem:[#allocation7 + $0x30] sm:$0xff]  ;;  %p751_p7 = por %p750_p6, %p749_p5 }
  0x4f   :  { %586 = vmatprep.subr.bf16.mxu1 %v585_v15  ;;  %v90_v22 = vld [vmem:[#allocation5 + $0x48] sm:$0xff]  ;;  %v593_v23 = vpack.c.bf16 %v183_v19, %v182_v18  ;;  %v185_v25 = vld [vmem:[#allocation7 + $0x38] sm:$0xff]  ;;  %v91_v27 = vld [vmem:[#allocation5 + $0x50] sm:$0xff] }
  0x50   :  { %588 = vmatpush3.bf16.msra.mxu1 %v585_v15  ;;  %v569_v26 = vpack.c.bf16 %v90_v22, %v89_v21  ;;  %v92_v28 = vld [vmem:[#allocation5 + $0x58] sm:$0xff]  ;;  %v597_v29 = vpack.c.bf16 %v185_v25, %v184_v24  ;;  %v186_v30 = vld [vmem:[#allocation7 + $0x40] sm:$0xff]  ;;  %v187_v31 = vld [vmem:[#allocation7 + $0x48] sm:$0xff]  ;;  %p752_p8 = pnand %p751_p7, %p745_p4 }
  0x51   :  { %560 = vmatpush3.bf16.msra.mxu0 %v557_v5  ;;  %590 = vmatprep.subr.bf16.mxu1 %v589_v17  ;;  %v573_v32 = vpack.c.bf16 %v92_v28, %v91_v27  ;;  %v93_v33 = vld [vmem:[#allocation5 + $0x60] sm:$0xff]  ;;  %v94_v34 = vld [vmem:[#allocation5 + $0x68] sm:$0xff]  ;;  %v601_v35 = vpack.c.bf16 %v187_v31, %v186_v30  ;;  %v188_v36 = vld [vmem:[#allocation7 + $0x50] sm:$0xff] }
  0x52   :  { %562 = vmatprep.subr.bf16.mxu0 %v561_v8  ;;  %v189_v37 = vld [vmem:[#allocation7 + $0x58] sm:$0xff]  ;;  %v577_v38 = vpack.c.bf16 %v94_v34, %v93_v33  ;;  %v95_v39 = vld [vmem:[#allocation5 + $0x70] sm:$0xff]  ;;  %v190_v42 = vld [vmem:[#allocation7 + $0x60] sm:$0xff] }
  0x53   :  { %v96_v40 = vld [vmem:[#allocation5 + $0x78] sm:$0xff]  ;;  %v605_v41 = vpack.c.bf16 %v189_v37, %v188_v36  ;;  %v191_v43 = vld [vmem:[#allocation7 + $0x68] sm:$0xff]  ;;  %v192_v47 = vld [vmem:[#allocation7 + $0x70] sm:$0xff] }
  0x54   :  { %592 = vmatpush3.bf16.msra.mxu1 %v589_v17  ;;  %v581_v44 = vpack.c.bf16 %v96_v40, %v95_v39  ;;  %v609_v45 = vpack.c.bf16 %v191_v43, %v190_v42  ;;  %v77_v46 = vld [vmem:[#allocation2 + $0x8] sm:$0xff]  ;;  %v275_v50 = vld [vmem:[#allocation8] sm:$0xff]  ;;  %v276_v51 = vld [vmem:[#allocation8 + $0x8] sm:$0xff] }
  0x55   :  { %564 = vmatpush3.bf16.msra.mxu0 %v561_v8  ;;  %594 = vmatprep.subr.bf16.mxu1 %v593_v23  ;;  %v193_v48 = vld [vmem:[#allocation7 + $0x78] sm:$0xff]  ;;  %v277_v52 = vld [vmem:[#allocation8 + $0x10] sm:$0xff]  ;;  %v617_v53 = vpack.c.bf16 %v276_v51, %v275_v50  ;;  %v279_v56 = vld [vmem:[#allocation8 + $0x20] sm:$0xff] }
  0x56   :  { %566 = vmatprep.subr.bf16.mxu0 %v565_v20  ;;  %v613_v49 = vpack.c.bf16 %v193_v48, %v192_v47  ;;  %v278_v54 = vld [vmem:[#allocation8 + $0x18] sm:$0xff]  ;;  %v280_v57 = vld [vmem:[#allocation8 + $0x28] sm:$0xff]  ;;  %v281_v59 = vld [vmem:[#allocation8 + $0x30] sm:$0xff] }
  0x57   :  { %v621_v55 = vpack.c.bf16 %v278_v54, %v277_v52  ;;  %v625_v58 = vpack.c.bf16 %v280_v57, %v279_v56  ;;  %v282_v60 = vld [vmem:[#allocation8 + $0x38] sm:$0xff]  ;;  %v283_v62 = vld [vmem:[#allocation8 + $0x40] sm:$0xff]  ;;  %v284_v63 = vld [vmem:[#allocation8 + $0x48] sm:$0xff] }
  0x58   :  { %596 = vmatpush3.bf16.msra.mxu1 %v593_v23  ;;  %v629_v61 = vpack.c.bf16 %v282_v60, %v281_v59  ;;  %v633_v0 = vpack.c.bf16 %v284_v63, %v283_v62  ;;  %v285_v1 = vld [vmem:[#allocation8 + $0x50] sm:$0xff]  ;;  %v286_v2 = vld [vmem:[#allocation8 + $0x58] sm:$0xff]  ;;  %v287_v4 = vld [vmem:[#allocation8 + $0x60] sm:$0xff] }
  0x59   :  { %568 = vmatpush3.bf16.msra.mxu0 %v565_v20  ;;  %598 = vmatprep.subr.bf16.mxu1 %v597_v29  ;;  %v637_v3 = vpack.c.bf16 %v286_v2, %v285_v1  ;;  %v288_v5 = vld [vmem:[#allocation8 + $0x68] sm:$0xff]  ;;  %v391_v7 = vld [vmem:[%s913_s4] ss:$0 sm:$0xff]  ;;  %v290_v15 = vld [vmem:[#allocation8 + $0x78] sm:$0xff] }
  0x5a   :  { %570 = vmatprep.subr.bf16.mxu0 %v569_v26  ;;  %v641_v6 = vpack.c.bf16 %v288_v5, %v287_v4  ;;  %v289_v14 = vld [vmem:[#allocation8 + $0x70] sm:$0xff] }
  0x5b   :  { %v645_v16 = vpack.c.bf16 %v290_v15, %v289_v14  ;;  %v392_v17 = vld [vmem:[%s913_s4 + $0x1] ss:$0 sm:$0xff]  ;;  %v393_v24 = vld [vmem:[%s913_s4 + $0x2] ss:$0 sm:$0xff] }
  0x5c   :  { %600 = vmatpush3.bf16.msra.mxu1 %v597_v29 }
  0x5d   :  { %572 = vmatpush3.bf16.msra.mxu0 %v569_v26  ;;  %602 = vmatprep.subr.bf16.mxu1 %v601_v35 }
  0x5e   :  { %574 = vmatprep.subr.bf16.mxu0 %v573_v32 }
  0x60   :  { %604 = vmatpush3.bf16.msra.mxu1 %v601_v35 }
  0x61   :  { %576 = vmatpush3.bf16.msra.mxu0 %v573_v32  ;;  %606 = vmatprep.subr.bf16.mxu1 %v605_v41 }
  0x62   :  { %578 = vmatprep.subr.bf16.mxu0 %v577_v38 }
  0x64   :  { %608 = vmatpush3.bf16.msra.mxu1 %v605_v41 }
  0x65   :  { %580 = vmatpush3.bf16.msra.mxu0 %v577_v38  ;;  %610 = vmatprep.subr.bf16.mxu1 %v609_v45 }
  0x66   :  { %582 = vmatprep.subr.bf16.mxu0 %v581_v44 }
  0x68   :  { %612 = vmatpush3.bf16.msra.mxu1 %v609_v45 }
  0x69   :  { %584 = vmatpush3.bf16.msra.mxu0 %v581_v44  ;;  %614 = vmatprep.subr.bf16.mxu1 %v613_v49 }
  0x6a   :  { %618 = vmatprep.subr.bf16.mxu0 %v617_v53 }
  0x6c   :  { %481 = vmatmul.mubr.f32.vlgmr.msra.gmra.mrb[0].mxu0 %v77_v46  ;;  %616 = vmatpush3.bf16.msra.mxu1 %v613_v49 }
  0x6d   :  { %620 = vmatpush3.bf16.msra.mxu0 %v617_v53 }
  0x6e   :  { %622 = vmatprep.subr.bf16.mxu0 %v621_v55 }
  0x71   :  { %624 = vmatpush3.bf16.msra.mxu0 %v621_v55 }
  0x72   :  { %626 = vmatprep.subr.bf16.mxu0 %v625_v58 }
  0x75   :  { %628 = vmatpush3.bf16.msra.mxu0 %v625_v58 }
  0x76   :  { %630 = vmatprep.subr.bf16.mxu0 %v629_v61 }
  0x79   :  { %632 = vmatpush3.bf16.msra.mxu0 %v629_v61 }
  0x7a   :  { %634 = vmatprep.subr.bf16.mxu0 %v633_v0 }
  0x7d   :  { %636 = vmatpush3.bf16.msra.mxu0 %v633_v0 }
  0x7e   :  { %638 = vmatprep.subr.bf16.mxu0 %v637_v3 }
  0x81   :  { %640 = vmatpush3.bf16.msra.mxu0 %v637_v3 }
  0x82   :  { %642 = vmatprep.subr.bf16.mxu0 %v641_v6 }
  0x85   :  { %644 = vmatpush3.bf16.msra.mxu0 %v641_v6 }
  0x86   :  { %646 = vmatprep.subr.bf16.mxu0 %v645_v16 }
  0x89   :  { %648 = vmatpush3.bf16.msra.mxu0 %v645_v16 }
 0x13f   :  { %v482_v8 = vpop.f32.mrb[0].mxu0 }
 0x140   :  { %v173_v9 = vadd.f32 %v482_v8, %v391_v7  ;;  %v167_v10 = vpop.f32.mrb[1].mxu0 }
 0x141   :  { %v168_v11 = vadd.f32 %v391_v7, %v167_v10 }
 0x142   :  { %v177_v13 = vmax.f32 %v173_v9, 0.0 }
 0x143   :  { %v176_v12 = vmax.f32 %v168_v11, 0.0 }
 0x145   :  { %515 = vmatprep.mubr.f32.mxu1 %v176_v12 }
 0x146   :  { %516 = vmatmul.mubr.f32.vlgmr.msra.gmra.mrb[0].mxu1 %v177_v13 }
 0x219   :  { %v517_v18 = vpop.f32.mrb[0].mxu1 }
 0x21a   :  { %v270_v19 = vadd.f32 %v517_v18, %v392_v17  ;;  %v264_v20 = vpop.f32.mrb[1].mxu1 }
 0x21b   :  { %v265_v21 = vadd.f32 %v392_v17, %v264_v20 }
 0x21c   :  { %v274_v23 = vmax.f32 %v270_v19, 0.0 }
 0x21d   :  { %v273_v22 = vmax.f32 %v265_v21, 0.0 }
 0x21f   :  { %550 = vmatprep.mubr.f32.mxu0 %v273_v22 }
 0x220   :  { %551 = vmatmul.mubr.f32.vlgmr.msra.gmra.mrb[2].mxu0 %v274_v23 }
 0x2f3   :  { %v552_v25 = vpop.f32.mrb[2].mxu0 }
 0x2f4   :  { %v367_v26 = vadd.f32 %v552_v25, %v393_v24  ;;  %v361_v27 = vpop.f32.mrb[3].mxu0 }
 0x2f5   :  { %v362_v28 = vadd.f32 %v393_v24, %v361_v27 }
 0x2f6   :  { %371 = vst [vmem:[#allocation10 + $0x8] sm:$0xff] %v367_v26 }
 0x2f7   :  { %370 = vst [vmem:[#allocation10] sm:$0xff] %v362_v28 }
 0x2f8   :  { %755 = shalt.err (!%p752_p8)
}
 0x2f9   :  { %s756_s4 = scalar_lea.hbm %s914_s5, 256 }
 0x2fa   :  { %p757_p9 = scmp.ne.s32.totalorder %s914_s5, %s756_s4  ;;  %p760_p10 = scmp.lt.u32.totalorder %s756_s4, %s914_s5 }
 0x2fc   :  { %p762_p11 = pnand %p760_p10, %p757_p9 }
 0x2fe   :  { %765 = shalt.err (!%p762_p11)
}
 0x2ff   :  { %383 = dma.vmem_to_hbm [thread:$0]  %s378_s23, 256, %s914_s5, [#allocation4], %s776_s30, %s776_s30, %s777_s6  }
 0x300   :  { %772 = dma.done.wait [#allocation4], 256  }
 0x301   :  { %773 = vsyncadd [#allocation4], 4294967040 }
 0x302   :  { %387 = vsyncpa [#allocation3], 1 }
 0x303   :  { %388 = vsyncpa [#allocation6], 1 }
 0x304   :  { %389 = vsyncpa [#allocation9], 1 }
 0x305   :  { %390 = vsyncpa [#allocation4], 1 }

</bundles_post_ra>
